<compile_context>
chip_gen: v6e
topology: v6e:2x2x1
jax: 0.10.0
libtpu: 0.0.40
codegen_flags: <defaults>
</compile_context>

<pallas_src>
import functools

import jax
import jax.numpy as jnp
from jax.experimental import pallas as pl
from jax.experimental.pallas import tpu as pltpu


def _round_up(x, n):
    return (x + n - 1) // n * n


# -----------------------------------------------------------------------------
# Pallas kernel: per-batch, time-tiled masked 2-layer MLP with fused pooling.
#   x_ref:    (tile_t, Din_pad)  bf16  region keypoints for one batch slab
#   m_ref:    (tile_t, 1)        f32   frame validity (1.0 valid / 0.0 pad)
#   w1_ref:   (Din_pad, H_k)     bf16  (VMEM-resident across grid steps)
#   b1_ref:   (1, H_k)           f32
#   w2_ref:   (H_k, H)           bf16
#   b2_ref:   (1, H)             f32
#   feat_ref: (tile_t, H)        bf16  masked per-frame features
#   psum_ref: (1, H)             f32   per-batch time-sum accumulator (output)
# -----------------------------------------------------------------------------
def _region_mlp_pool_kernel(x_ref, m_ref, w1_ref, b1_ref, w2_ref, b2_ref,
                            feat_ref, psum_ref):
    t = pl.program_id(1)

    @pl.when(t == 0)
    def _():
        psum_ref[...] = jnp.zeros_like(psum_ref)

    x = x_ref[...]                                    # (tile_t, Din_pad) bf16
    m = m_ref[...]                                    # (tile_t, 1)       f32

    # Linear -> ReLU -> Linear; bf16 MXU inputs, f32 accumulation.
    h1 = jnp.dot(x, w1_ref[...],
                 preferred_element_type=jnp.float32) + b1_ref[...]
    h1 = jnp.maximum(h1, 0.0)
    h2 = jnp.dot(h1.astype(jnp.bfloat16), w2_ref[...],
                 preferred_element_type=jnp.float32) + b2_ref[...]

    feat = h2 * m                                     # zero padded frames (f32)
    feat_ref[...] = feat.astype(feat_ref.dtype)       # bf16 writeback
    psum_ref[...] += jnp.sum(feat, axis=0, keepdims=True)   # f32 time-sum


def region_encoder_forward(keypoints, mask, params, joint_idx, *, tile_t=512):
    """keypoints: (B, T, K, C) f32; mask: (B, T) -> ((B,T,H) bf16, (B,H) f32)."""
    B, T, K, C = keypoints.shape
    idx = jnp.asarray(joint_idx, dtype=jnp.int32)
    J = idx.shape[0]
    Din = J * C

    w1, b1, w2, b2 = params
    H = w1.shape[1]

    Din_pad = _round_up(Din, 16)       # bf16 sublane multiple for w1 / x lanes
    H_k = _round_up(H, 16)             # layer-1 out / layer-2 contraction dim

    # Time tiling: big tiles amortize per-step overhead; clamp to padded T.
    tile_t = min(tile_t, _round_up(T, 8))
    T_pad = _round_up(T, tile_t)

    # ---- glue in plain JAX: region gather, padding, dtype casts -------------
    x = jnp.take(keypoints, idx, axis=2).reshape(B, T, Din)
    x_p = jnp.pad(x, ((0, 0), (0, T_pad - T), (0, Din_pad - Din))
                  ).astype(jnp.bfloat16)                       # (B, T_pad, Din_pad)
    m_p = jnp.pad(mask.astype(jnp.float32),
                  ((0, 0), (0, T_pad - T)))[..., None]         # (B, T_pad, 1)

    # Zero-pad: padded w1/b1 cols -> zero hidden units; padded w2 rows
    # contribute nothing.  Output columns are NOT padded.
    w1_p = jnp.pad(w1, ((0, Din_pad - Din), (0, H_k - H))).astype(jnp.bfloat16)
    b1_p = jnp.pad(b1.reshape(1, H), ((0, 0), (0, H_k - H))).astype(jnp.float32)
    w2_p = jnp.pad(w2, ((0, H_k - H), (0, 0))).astype(jnp.bfloat16)
    b2_p = b2.reshape(1, H).astype(jnp.float32)

    grid = (B, T_pad // tile_t)

    feats_p, psum = pl.pallas_call(
        _region_mlp_pool_kernel,
        out_shape=(jax.ShapeDtypeStruct((B, T_pad, H), jnp.bfloat16),
                   jax.ShapeDtypeStruct((B, 1, H), jnp.float32)),
        grid_spec=pltpu.PrefetchScalarGridSpec(
            num_scalar_prefetch=0,
            grid=grid,
            in_specs=[
                pl.BlockSpec((None, tile_t, Din_pad), lambda b, t: (b, t, 0)),  # x
                pl.BlockSpec((None, tile_t, 1), lambda b, t: (b, t, 0)),        # mask
                pl.BlockSpec((Din_pad, H_k), lambda b, t: (0, 0)),              # w1
                pl.BlockSpec((1, H_k), lambda b, t: (0, 0)),                    # b1
                pl.BlockSpec((H_k, H), lambda b, t: (0, 0)),                    # w2
                pl.BlockSpec((1, H), lambda b, t: (0, 0)),                      # b2
            ],
            out_specs=[
                pl.BlockSpec((None, tile_t, H), lambda b, t: (b, t, 0)),        # feats
                pl.BlockSpec((None, 1, H), lambda b, t: (b, 0, 0)),             # pooled sum
            ],
        ),
        compiler_params=pltpu.CompilerParams(
            dimension_semantics=("parallel", "arbitrary")),
    )(x_p, m_p, w1_p, b1_p, w2_p, b2_p)

    # Row-only trim (no column slice); features already masked in-kernel.
    feats = feats_p[:, :T, :]                                   # (B, T, H) bf16

    # Masked mean: divide the in-kernel f32 time-sum by the valid-frame count.
    # TODO(synk): fully-masked sequences get pooled == 0 via the clamp; verify
    # the real KeypointModule uses the same guard.
    denom = jnp.maximum(jnp.sum(mask.astype(jnp.float32), axis=1, keepdims=True),
                        1.0)                                    # (B, 1)
    pooled = psum[:, 0, :] / denom                              # (B, H) f32
    return feats, pooled


def init_params(key, d_in, hidden):
    """Deterministic synthetic parameters (Linear(d_in,H), Linear(H,H))."""
    k1, k2 = jax.random.split(key, 2)
    w1 = (jax.random.normal(k1, (d_in, hidden), jnp.float32)
          / jnp.sqrt(jnp.float32(d_in)))
    b1 = jnp.zeros((1, hidden), jnp.float32)
    w2 = (jax.random.normal(k2, (hidden, hidden), jnp.float32)
          / jnp.sqrt(jnp.float32(hidden)))
    b2 = jnp.zeros((1, hidden), jnp.float32)
    return (w1, b1, w2, b2)


def _ref_forward(keypoints, mask, params, joint_idx):
    """Pure-JAX f32 reference for numeric validation."""
    w1, b1, w2, b2 = params
    B, T, K, C = keypoints.shape
    idx = jnp.asarray(joint_idx, dtype=jnp.int32)
    x = jnp.take(keypoints, idx, axis=2).reshape(B, T, -1)
    h1 = jnp.maximum(x @ w1 + b1.reshape(1, -1), 0.0)
    h2 = h1 @ w2 + b2.reshape(1, -1)
    feats = h2 * mask[..., None]
    denom = jnp.maximum(jnp.sum(mask, axis=1, keepdims=True), 1.0)
    pooled = jnp.sum(feats, axis=1) / denom
    return feats, pooled


if __name__ == "__main__":
    # Small shapes consistent with the module: T frames, K total keypoints with
    # C coords each, region defined by joint_idx, hidden width H.
    B, T, K, C = 2, 8, 11, 3          # batch, frames, total joints, coords
    joint_idx = [0, 2, 5, 7]          # this region's joints (J = 4 -> Din = 12)
    H = 32                            # hidden dim

    key = jax.random.PRNGKey(0)
    k_kp, k_par = jax.random.split(key, 2)

    keypoints = jax.random.normal(k_kp, (B, T, K, C), jnp.float32)
    # Valid-frame mask: second sample has last 3 frames padded.
    mask = jnp.ones((B, T), jnp.float32).at[1, T - 3:].set(0.0)

    params = init_params(k_par, len(joint_idx) * C, H)

    fwd = jax.jit(functools.partial(region_encoder_forward,
                                    params=params, joint_idx=joint_idx))
    feats, pooled = fwd(keypoints, mask)
    jax.block_until_ready((feats, pooled))

    assert feats.shape == (B, T, H)
    assert pooled.shape == (B, H)
    # Padded frames of sample 1 must be zeroed by the in-kernel mask.
    assert float(jnp.max(jnp.abs(feats[1, T - 3:].astype(jnp.float32)))) == 0.0

    # bf16 MXU path -> compare against f32 reference with a loose tolerance.
    ref_feats, ref_pooled = _ref_forward(keypoints, mask, params, joint_idx)
    feat_err = float(jnp.max(jnp.abs(feats.astype(jnp.float32) - ref_feats)))
    pool_err = float(jnp.max(jnp.abs(pooled - ref_pooled)))
    assert feat_err < 0.15, f"feature error too large: {feat_err}"
    assert pool_err < 0.15, f"pooled error too large: {pool_err}"

    print("KERNEL_OK")
</pallas_src>

<mosaic_0001>
module attributes {stable_mosaic.version = 11 : i64} {
  func.func @_region_mlp_pool_kernel(%arg0: i32, %arg1: i32, %arg2: memref<1x8x16xbf16, #tpu.memory_space<vmem>>, %arg3: memref<1x8x1xf32, #tpu.memory_space<vmem>>, %arg4: memref<16x32xbf16, #tpu.memory_space<vmem>>, %arg5: memref<1x32xf32, #tpu.memory_space<vmem>>, %arg6: memref<32x32xbf16, #tpu.memory_space<vmem>>, %arg7: memref<1x32xf32, #tpu.memory_space<vmem>>, %arg8: memref<1x8x32xbf16, #tpu.memory_space<vmem>>, %arg9: memref<1x1x32xf32, #tpu.memory_space<vmem>>) attributes {dimension_semantics = [#tpu.dimension_semantics<parallel>, #tpu.dimension_semantics<arbitrary>], iteration_bounds = array<i64: 2, 1>, scalar_prefetch = 0 : i64, scratch_operands = 0 : i64, tpu.core_type = #tpu.core_type<tc>, window_params = [{transform_indices = @transform_0, window_bounds = array<i64: 1, 8, 16>}, {transform_indices = @transform_1, window_bounds = array<i64: 1, 8, 1>}, {pipeline_mode = #tpu.pipeline_mode<synchronous>, transform_indices = @transform_2, window_bounds = array<i64: 16, 32>}, {pipeline_mode = #tpu.pipeline_mode<synchronous>, transform_indices = @transform_3, window_bounds = array<i64: 1, 32>}, {pipeline_mode = #tpu.pipeline_mode<synchronous>, transform_indices = @transform_4, window_bounds = array<i64: 32, 32>}, {pipeline_mode = #tpu.pipeline_mode<synchronous>, transform_indices = @transform_5, window_bounds = array<i64: 1, 32>}, {transform_indices = @transform_6, window_bounds = array<i64: 1, 8, 32>}, {transform_indices = @transform_7, window_bounds = array<i64: 1, 1, 32>}]} {
    %c0_i32 = arith.constant 0 : i32
    %0 = arith.cmpi eq, %arg1, %c0_i32 : i32
    %1 = arith.extui %0 : i1 to i32
    %c0_i32_0 = arith.constant 0 : i32
    %2 = arith.cmpi ne, %1, %c0_i32_0 : i32
    scf.if %2 {
      %cst_26 = arith.constant 0.000000e+00 : f32
      %34 = vector.broadcast %cst_26 : f32 to vector<1x32xf32>
      %c0_27 = arith.constant 0 : index
      %c0_28 = arith.constant 0 : index
      %c0_29 = arith.constant 0 : index
      %35 = vector.load %arg9[%c0_27, %c0_28, %c0_29] : memref<1x1x32xf32, #tpu.memory_space<vmem>>, vector<1x1x32xf32>
      %36 = vector.shape_cast %35 : vector<1x1x32xf32> to vector<1x32xf32>
      %37 = vector.shape_cast %34 : vector<1x32xf32> to vector<1x1x32xf32>
      tpu.vector_store %arg9[%c0_27, %c0_28, %c0_29], %37 {strides = array<i32>} : memref<1x1x32xf32, #tpu.memory_space<vmem>>, vector<1x1x32xf32>,
    } else {
    }
    %c0 = arith.constant 0 : index
    %c0_1 = arith.constant 0 : index
    %c0_2 = arith.constant 0 : index
    %3 = vector.load %arg2[%c0, %c0_1, %c0_2] : memref<1x8x16xbf16, #tpu.memory_space<vmem>>, vector<1x8x16xbf16>
    %4 = vector.shape_cast %3 : vector<1x8x16xbf16> to vector<8x16xbf16>
    %c0_3 = arith.constant 0 : index
    %c0_4 = arith.constant 0 : index
    %c0_5 = arith.constant 0 : index
    %5 = vector.load %arg3[%c0_3, %c0_4, %c0_5] : memref<1x8x1xf32, #tpu.memory_space<vmem>>, vector<1x8x1xf32>
    %6 = vector.shape_cast %5 : vector<1x8x1xf32> to vector<8x1xf32>
    %c0_6 = arith.constant 0 : index
    %c0_7 = arith.constant 0 : index
    %7 = vector.load %arg4[%c0_6, %c0_7] : memref<16x32xbf16, #tpu.memory_space<vmem>>, vector<16x32xbf16>
    %cst = arith.constant dense<0.000000e+00> : vector<8x32xf32>
    %8 = tpu.matmul %4, %7, %cst {dimension_numbers = #tpu.dot_dimension_numbers<[1], [0], [0], [1], [0, 0, 1, 1], [], []>} : vector<8x16xbf16>, vector<16x32xbf16>, vector<8x32xf32> -> vector<8x32xf32>
    %c0_8 = arith.constant 0 : index
    %c0_9 = arith.constant 0 : index
    %9 = vector.load %arg5[%c0_8, %c0_9] : memref<1x32xf32, #tpu.memory_space<vmem>>, vector<1x32xf32>
    %10 = vector.broadcast %9 : vector<1x32xf32> to vector<8x32xf32>
    %11 = arith.addf %8, %10 : vector<8x32xf32>
    %cst_10 = arith.constant 0.000000e+00 : f32
    %12 = vector.broadcast %cst_10 : f32 to vector<8x32xf32>
    %13 = arith.maximumf %11, %12 : vector<8x32xf32>
    %14 = arith.truncf %13 : vector<8x32xf32> to vector<8x32xbf16>
    %c0_11 = arith.constant 0 : index
    %c0_12 = arith.constant 0 : index
    %15 = vector.load %arg6[%c0_11, %c0_12] : memref<32x32xbf16, #tpu.memory_space<vmem>>, vector<32x32xbf16>
    %cst_13 = arith.constant dense<0.000000e+00> : vector<8x32xf32>
    %16 = tpu.matmul %14, %15, %cst_13 {dimension_numbers = #tpu.dot_dimension_numbers<[1], [0], [0], [1], [0, 0, 1, 1], [], []>} : vector<8x32xbf16>, vector<32x32xbf16>, vector<8x32xf32> -> vector<8x32xf32>
    %c0_14 = arith.constant 0 : index
    %c0_15 = arith.constant 0 : index
    %17 = vector.load %arg7[%c0_14, %c0_15] : memref<1x32xf32, #tpu.memory_space<vmem>>, vector<1x32xf32>
    %18 = vector.broadcast %17 : vector<1x32xf32> to vector<8x32xf32>
    %19 = arith.addf %16, %18 : vector<8x32xf32>
    %20 = vector.broadcast %6 : vector<8x1xf32> to vector<8x32xf32>
    %21 = arith.mulf %19, %20 : vector<8x32xf32>
    %22 = arith.truncf %21 : vector<8x32xf32> to vector<8x32xbf16>
    %c0_16 = arith.constant 0 : index
    %c0_17 = arith.constant 0 : index
    %c0_18 = arith.constant 0 : index
    %23 = vector.load %arg8[%c0_16, %c0_17, %c0_18] : memref<1x8x32xbf16, #tpu.memory_space<vmem>>, vector<1x8x32xbf16>
    %24 = vector.shape_cast %23 : vector<1x8x32xbf16> to vector<8x32xbf16>
    %25 = vector.shape_cast %22 : vector<8x32xbf16> to vector<1x8x32xbf16>
    tpu.vector_store %arg8[%c0_16, %c0_17, %c0_18], %25 {strides = array<i32>} : memref<1x8x32xbf16, #tpu.memory_space<vmem>>, vector<1x8x32xbf16>,
    %c0_19 = arith.constant 0 : index
    %c0_20 = arith.constant 0 : index
    %c0_21 = arith.constant 0 : index
    %26 = vector.load %arg9[%c0_19, %c0_20, %c0_21] : memref<1x1x32xf32, #tpu.memory_space<vmem>>, vector<1x1x32xf32>
    %27 = vector.shape_cast %26 : vector<1x1x32xf32> to vector<1x32xf32>
    %cst_22 = arith.constant dense<0.000000e+00> : vector<32xf32>
    %28 = vector.multi_reduction <add>, %21, %cst_22 [0] : vector<8x32xf32> to vector<32xf32>
    %29 = vector.shape_cast %28 : vector<32xf32> to vector<1x32xf32>
    %30 = arith.addf %27, %29 : vector<1x32xf32>
    %c0_23 = arith.constant 0 : index
    %c0_24 = arith.constant 0 : index
    %c0_25 = arith.constant 0 : index
    %31 = vector.load %arg9[%c0_23, %c0_24, %c0_25] : memref<1x1x32xf32, #tpu.memory_space<vmem>>, vector<1x1x32xf32>
    %32 = vector.shape_cast %31 : vector<1x1x32xf32> to vector<1x32xf32>
    %33 = vector.shape_cast %30 : vector<1x32xf32> to vector<1x1x32xf32>
    tpu.vector_store %arg9[%c0_23, %c0_24, %c0_25], %33 {strides = array<i32>} : memref<1x1x32xf32, #tpu.memory_space<vmem>>, vector<1x1x32xf32>,
    return
  }
  func.func @transform_0(%arg0: i32, %arg1: i32) -> (i32, i32, i32) {
    %c0_i32 = arith.constant 0 : i32
    %c0_i32_0 = arith.constant 0 : i32
    return %arg0, %arg1, %c0_i32 : i32, i32, i32
  }
  func.func @transform_1(%arg0: i32, %arg1: i32) -> (i32, i32, i32) {
    %c0_i32 = arith.constant 0 : i32
    %c0_i32_0 = arith.constant 0 : i32
    return %arg0, %arg1, %c0_i32 : i32, i32, i32
  }
  func.func @transform_2(%arg0: i32, %arg1: i32) -> (i32, i32) {
    %c0_i32 = arith.constant 0 : i32
    %c0_i32_0 = arith.constant 0 : i32
    %c0_i32_1 = arith.constant 0 : i32
    return %c0_i32, %c0_i32_0 : i32, i32
  }
  func.func @transform_3(%arg0: i32, %arg1: i32) -> (i32, i32) {
    %c0_i32 = arith.constant 0 : i32
    %c0_i32_0 = arith.constant 0 : i32
    %c0_i32_1 = arith.constant 0 : i32
    return %c0_i32, %c0_i32_0 : i32, i32
  }
  func.func @transform_4(%arg0: i32, %arg1: i32) -> (i32, i32) {
    %c0_i32 = arith.constant 0 : i32
    %c0_i32_0 = arith.constant 0 : i32
    %c0_i32_1 = arith.constant 0 : i32
    return %c0_i32, %c0_i32_0 : i32, i32
  }
  func.func @transform_5(%arg0: i32, %arg1: i32) -> (i32, i32) {
    %c0_i32 = arith.constant 0 : i32
    %c0_i32_0 = arith.constant 0 : i32
    %c0_i32_1 = arith.constant 0 : i32
    return %c0_i32, %c0_i32_0 : i32, i32
  }
  func.func @transform_6(%arg0: i32, %arg1: i32) -> (i32, i32, i32) {
    %c0_i32 = arith.constant 0 : i32
    %c0_i32_0 = arith.constant 0 : i32
    return %arg0, %arg1, %c0_i32 : i32, i32, i32
  }
  func.func @transform_7(%arg0: i32, %arg1: i32) -> (i32, i32, i32) {
    %c0_i32 = arith.constant 0 : i32
    %c0_i32_0 = arith.constant 0 : i32
    %c0_i32_1 = arith.constant 0 : i32
    return %arg0, %c0_i32, %c0_i32_0 : i32, i32, i32
  }
}

</mosaic_0001>

<bundles_post_ra>
// kernel: region_encoder_forward.1
= control target key start
LH: loop header
LB: loop body
LE: loop exit
PB: predicated region body
PF: predicated region fallthrough
CT: control target
= control target key end

     0   :  { %13 = vsyncpa [#allocation3], 0  ;;  %s982_s0 = inlined_call_operand.vmem [shape: bf16[2,8,16], index: 0, kind: input, shape index: {}]   ;;  %s983_s1 = inlined_call_operand.vmem [shape: f32[2,8,1], index: 1, kind: input, shape index: {}]   ;;  %s984_s2 = inlined_call_operand.vmem [shape: bf16[16,32], index: 2, kind: input, shape index: {}]   ;;  %s985_s3 = inlined_call_operand.vmem [shape: f32[1,32], index: 3, kind: input, shape index: {}, may-alias: {3,5}]   ;;  %s986_s4 = inlined_call_operand.vmem [shape: bf16[32,32], index: 4, kind: input, shape index: {}]   ;;  %s987_s5 = inlined_call_operand.vmem [shape: f32[1,32], index: 5, kind: input, shape index: {}, may-alias: {3,5}]   ;;  %s988_s6 = inlined_call_operand.hbm [shape: bf16[2,8,32], index: 6, kind: output, shape index: {0}]   ;;  %s989_s7 = inlined_call_operand.vmem [shape: f32[2,1,32], index: 7, kind: output, shape index: {1}]  }
   0x1   :  { %15 = vsyncpa [#allocation3 + $0x1], 0  ;;  %s841_s24 = smov 0   ;;  %s843_s25 = smov 0  }
   0x2   :  { %s845_s26 = smov 0   ;;  %s847_s27 = smov 0  }
   0x3   :  { %s849_s28 = smov 0   ;;  %s851_s29 = smov 0  }
   0x4 LB: > { %s619_s30 = sadd.s32 4294967295, %s795_s29   ;;  %s620_s8 = sadd.s32 4294967294, %s795_s29   ;;  %s795_s29 = sphi %s851_s29, %s21_s29   ;;  %s791_s28 = sphi %s849_s28, %s996_s28   ;;  %s787_s27 = sphi %s847_s27, %s995_s27   ;;  %s783_s26 = sphi %s845_s26, %s994_s26   ;;  %s779_s25 = sphi %s843_s25, %s993_s25   ;;  %s775_s24 = sphi %s841_s24, %s992_s24  }
   0x5   : > { %s33_s9 = sadd.s32 1, %s791_s28  ;;  %s182_s10 = sadd.s32 1, %s783_s26 }
   0x6   : > { %p35_p0 = scmp.ge.s32.totalorder %s33_s9, 2  ;;  %p192_p1 = scmp.ne.s32.totalorder %s783_s26, %s779_s25 }
   0x7   : > { %p193_p2 = scmp.eq.s32.totalorder %s619_s30, 1  ;;  %p198_p3 = scmp.ne.s32.totalorder %s779_s25, %s775_s24 }
   0x8   : > { %s998_s9 = smov (%p35_p0, %s33_s9), 0  ;;  %p199_p5 = scmp.eq.s32.totalorder %s620_s8, 1 }
   0x9   : > { %p881_p4 = por %p193_p2, %p192_p1  ;;  %s177_s12 = ssub.s32 %s791_s28, %s998_s9 }
   0xa   : > { %p623_p6 = scmp.ge.s32.totalorder %s795_s29, 1  ;;  %p180_p7 = scmp.eq.s32.totalorder %s177_s12, 0 }
   0xb   : > { %p888_p8 = por %p199_p5, %p198_p3  ;;  %p275_p9 = scmp.lt.s32.totalorder %s795_s29, 3 }
   0xc   : > { %s894_s14 = scalar_select %p180_p7, %s783_s26, %s182_s10  }
   0xd   : > { %p276_p10 = pnand %p623_p6, %p275_p9 }
   0xe   : > { %p319_p11 = scmp.lt.s32.totalorder (!%p276_p10), %s787_s27, 1  ;;  %s311_s23 = sand.u32 (!%p276_p10), 1, %s779_s25  }
   0xf   : > { %279 = sbr.rel (%p276_p10) target bundleno = 447 (0x1bf), region = 44  ;;  %s635_s12 = sshll.u32 (!%p276_p10), %s787_s27, 6 }
  0x10   : > { %s933_s19 = scalar_lea.hbm (!%p276_p10), %s988_s6, %s635_s12 }
  0x14   : > { %v716_v0 = vld [vmem:[%s984_s2] sm:$0xff]   ;;  %v797_v1 = vmov 0.0   ;;  %vm798_vm0 = vmmov 0   ;;  %s320_s17 = scalar_select %p319_p11, %s787_s27, 1  ;;  %vm360_vm1 = vcmask 130048   ;;  %v717_v3 = vld [vmem:[%s986_s4 + $0x8] sm:$0xff]  }
  0x15   : > { %643 = vmatprep.subr.bf16.mxu0 %v797_v1  ;;  %649 = vmatprep.subr.bf16.mxu1 %v797_v1  ;;  %v718_v4 = vld [vmem:[%s986_s4] sm:$0xff]   ;;  %v799_v5 = vmov 0   ;;  %vm429_vm2 = vcmask 261120   ;;  %vm341_vm3 = vcmask 253952   ;;  %vm480_vm4 = vcmask 257024   ;;  %s494_s27 = scalar_lea.sflag [#allocation3], %s311_s23 }
  0x16   : > { %644 = vmatpush3.bf16.msra.mxu0 %v716_v0  ;;  %645 = vmatprep.mubr.msk.bf16.mxu0 %vm798_vm0, %v797_v1  ;;  %s625_s18 = sshll.u32 %s320_s17, 2  ;;  %s626_s10 = sshll.u32 %s320_s17, 3  ;;  %v627_v7 = vld [vmem:[%s985_s3] ss:$0 sm:$0xff] }
  0x17   : > { %653 = vmatprep.mubr.msk.bf16.mxu1 %vm798_vm0, %v797_v1  ;;  %s325_s21 = scalar_lea.vmem %s982_s0, %s625_s18  ;;  %650 = vmatpush3.bf16.msra.mxu1 %v717_v3  ;;  %s332_s16 = scalar_lea.vmem %s983_s1, %s626_s10  ;;  %v630_v15 = vld [vmem:[%s987_s5] ss:$0 sm:$0xff] }
  0x18   : > { %v343_v2 = vld [vmem:[%s325_s21] sm:$0xf]  ;;  %651 = vmatprep.subr.bf16.mxu1 %v797_v1  ;;  %715 = vset.pattern.permute.xlu0 %v799_v5  ;;  %s920_s22 = scalar_lea.vmem %s989_s7, %s320_s17  ;;  %s624_s10 = sshll.u32 %s311_s23, 2 }
  0x19   : > { %646 = vmatmul.mubr.msk.bf16.vlgmr.msra.gmra.mxu0 %vm360_vm1, %v343_v2  ;;  %v344_v6 = vld [vmem:[%s332_s16] sm:$0xff]  ;;  %342 = vst.msk [vmem:[%s920_s22] sm:$0x1] %vm341_vm3, %v797_v1  ;;  %s313_s15 = scalar_lea.vmem [#allocation2], %s624_s10  ;;  %s800_s21 = smov [#allocation2]  }
  0x1a   : > { %475 = vperm.xlu0 %715, %v344_v6   ;;  %s511_s16 = sshll.u32 %s313_s15, 4  ;;  %s723_s30 = sshll.u32 %s800_s21, 4  ;;  %s935_s16 = int_to_ptr.vmem [resolvable:$true] %s511_s16  ;;  %s724_s30 = int_to_ptr.vmem [resolvable:$false] %s723_s30 }
  0x1b   : > { %652 = vmatpush3.bf16.msra.mxu1 %v718_v4  ;;  %s719_s20 = scalar_lea.vmem %s935_s16, 64  ;;  %s725_s8 = scalar_lea.vmem %s724_s30, 128 }
  0x1c   : > { %p720_p12 = scmp.ne.s32.totalorder %s935_s16, %s719_s20  ;;  %p726_p1 = scmp.lt.s32.totalorder %s935_s16, %s724_s30 }
  0x1d   : > { %p727_p2 = scmp.lt.s32.totalorder %s725_s8, %s719_s20 }
  0x1e   : > { %p721_p13 = pnand %p720_p12, %p881_p4 }
  0x1f   : > { %p728_p3 = por %p727_p2, %p726_p1 }
  0x20   : > { %p722_p0 = pneg %p721_p13 }
  0x22   : > { %p729_p5 = pnand %p728_p3, %p722_p0 }
  0x95   : > { %v476_v17 = vpop.permute.xlu0 %475 }
  0xd9   : > { %v398_v8 = vpop.f32.mrf.mxu0 }
  0xda   : > { %v399_v9 = vadd.f32 %v627_v7, %v398_v8 }
  0xdb   : > { %v647_v10 = vpop.f32.mrf.mxu0 }
  0xdc   : > { %v404_v11 = vmax.f32 %v399_v9, 0.0 }
  0xdd   : > { %v401_v12 = vpop.f32.mrf.mxu0 }
  0xde   : > { %v405_v13 = vpack.c.bf16 %v404_v11, %v404_v11 }
  0xdf   : > { %v648_v14 = vpop.f32.mrf.mxu0 }
  0xe0   : > { %654 = vmatmul.mubr.msk.bf16.vlgmr.msra.gmra.mxu1 %vm429_vm2, %v405_v13 }
 0x1a0   : > { %v467_v16 = vpop.f32.mrf.mxu1 }
 0x1a1   : > { %v468_v18 = vadd.f32 %v630_v15, %v467_v16 }
 0x1a2   : > { %v655_v19 = vpop.f32.mrf.mxu1 }
 0x1a3   : > { %v478_v20 = vmul.f32 %v476_v17, %v468_v18 }
 0x1a4   : > { %v470_v21 = vpop.f32.mrf.mxu1 }
 0x1a5   : > { %v479_v22 = vpack.c.bf16 %v478_v20, %v478_v20  ;;  %v483_v23 = vsel %vm429_vm2, %v478_v20, 0.0 }
 0x1a6   : > { %v484_v24 = vrot.slane %v483_v23, 4  ;;  %v656_v25 = vpop.f32.mrf.mxu1 }
 0x1a7   : > { %481 = vst.msk [vmem:[%s313_s15] sm:$0xf] %vm480_vm4, %v479_v22 }
 0x1a8   : > { %v485_v26 = vadd.f32 %v484_v24, %v483_v23 }
 0x1a9   : > { %732 = shalt.err (!%p729_p5)
}
 0x1aa   : > { %s733_s10 = scalar_lea.hbm %s933_s19, 64  ;;  %s737_s15 = scalar_lea.hbm %s988_s6, 128 }
 0x1ab   : > { %p734_p6 = scmp.ne.s32.totalorder %s933_s19, %s733_s10  ;;  %p738_p10 = scmp.lt.s32.totalorder %s933_s19, %s988_s6 }
 0x1ac   : > { %p739_p11 = scmp.lt.s32.totalorder %s737_s15, %s733_s10 }
 0x1ad   : > { %p735_p7 = pnand %p734_p6, %p881_p4 }
 0x1ae   : > { %p740_p12 = por %p739_p11, %p738_p10 }
 0x1af   : > { %p736_p9 = pneg %p735_p7 }
 0x1b1   : > { %p741_p13 = pnand %p740_p12, %p736_p9 }
 0x1b3   : > { %744 = shalt.err (!%p741_p13)
}
 0x1b4   : > { %657 = dma.vmem_to_hbm [thread:$0]  (%p881_p4), %s935_s16, 64, %s933_s19, %s494_s27   ;;  %v486_v27 = vrot.slane %v485_v26, 2  ;;  %v482_v30 = vld [vmem:[%s920_s22] sm:$0x1] }
 0x1b6   : > { %v487_v28 = vadd.f32 %v486_v27, %v485_v26 }
 0x1b8   : > { %v488_v29 = vrot.slane %v487_v28, 1 }
 0x1ba   : > { %v489_v31 = vadd.f32 %v488_v29, %v487_v28 }
 0x1bc   : > { %v490_v32 = vadd.f32 %v489_v31, %v482_v30 }
 0x1be   : > { %492 = vst.msk [vmem:[%s920_s22] sm:$0x1] %vm341_vm3, %v490_v32 }
 0x1bf PF: > { %p663_p0 = scmp.ge.s32.totalorder %s795_s29, 2  ;;  %s526_s20 = sand.u32 1, %s775_s24  }
 0x1c0   : > { %s527_s11 = scalar_lea.sflag [#allocation3], %s526_s20 }
 0x1c1   : > { %p660_p1 = pnand %p663_p0, %p888_p8 }
 0x1c3   : > { %p661_p2 = pneg %p660_p1 }
 0x1c5   : > { %770 = dma.done.wait (%p661_p2), %s527_s11, 64  }
 0x1c6   : > { %772 = vsyncadd (%p661_p2), %s527_s11, 4294967232  ;;  %s21_s29 = sadd.s32 1, %s795_s29   ;;  %s992_s24 = smov %s779_s25 }
 0x1c7   : > { %p18_p4 = scmp.ge.s32.totalorder %s21_s29, 4   ;;  %s993_s25 = smov %s783_s26 }
 0x1c8   : > { %s994_s26 = smov %s894_s14  ;;  %s995_s27 = smov %s791_s28 }
 0x1c9   : > { %s996_s28 = smov %s998_s9  ;;  %20 = sbr.rel (!%p18_p4) target bundleno = 4 (0x4), region = 98 }
 0x1ce   :  { %538 = vsyncpa [#allocation3], 1 }
 0x1cf   :  { %540 = vsyncpa [#allocation3 + $0x1], 1 }

</bundles_post_ra>
